<compile_context>
chip_gen: v5e
topology: v5e:2x2
jax: 0.10.0
libtpu: 0.0.40
codegen_flags: <defaults>
</compile_context>

<pallas_src>
import functools

import jax
import jax.numpy as jnp
from jax.experimental import pallas as pl
from jax.experimental.pallas import tpu as pltpu

N, C_IN, C_OUT, L, K = 2, 4, 8, 16, 3
BN_EPS = 1e-5
LANE = 128                            # conv result lanes [0,128), identity lanes [128,256)
VMEM_LIMIT_BYTES = 32 * 1024 * 1024   # explicit scoped-VMEM budget (fits v7x 64 MiB physical)


def _matmul_stats_kernel(u_ref, wf_ref, z_ref, stats_ref, acc_ref, *, n_rows):
    """Pass 1: fused conv+identity matmul for one row block + BN stat accumulation."""
    i = pl.program_id(0)

    @pl.when(i == 0)
    def _():
        acc_ref[...] = jnp.zeros_like(acc_ref)

    # Single MXU push: causal-conv taps (lanes [0,128)) and the identity/downsample
    # projection incl. its bias (lanes [128,256)).  bf16 operands, f32 accumulate.
    z = jnp.dot(u_ref[...], wf_ref[...], preferred_element_type=jnp.float32)
    z_ref[...] = z                                   # lane-dense (TM, 256) store

    conv = z[:, :LANE]                               # vreg-aligned slice
    acc_ref[0:1, :] += jnp.sum(conv, axis=0, keepdims=True)
    acc_ref[1:2, :] += jnp.sum(conv * conv, axis=0, keepdims=True)

    @pl.when(i == pl.num_programs(0) - 1)
    def _():
        # Biased (train-mode) batch stats over ALL n_rows = N*(L+K-1) real rows.
        # Zero-padded tail rows contribute 0 to both sums, so dividing by the true
        # n_rows keeps mean/var exact despite the row padding.
        inv_n = 1.0 / n_rows
        mean = acc_ref[0:1, :] * inv_n
        var = jnp.maximum(acc_ref[1:2, :] * inv_n - mean * mean, 0.0)
        stats_ref[0:1, :] = mean
        stats_ref[1:2, :] = jax.lax.rsqrt(var + BN_EPS)      # EUP op (free vs VALU)


def _bn_relu_skip_kernel(z_ref, stats_ref, params_ref, o_ref):
    """Pass 2: BN normalize + ReLU + skip add, one row block per 'parallel' grid step."""
    conv = z_ref[:, :LANE]           # vreg-aligned
    ident = z_ref[:, LANE:]          # identity projection + downsample bias (already summed)
    mean = stats_ref[0:1, :]
    inv_std = stats_ref[1:2, :]
    gamma = params_ref[0:1, :]
    beta = params_ref[1:2, :]
    # Lanes >= C_OUT carry gamma=beta=0 and ident=0, so they produce exact zeros.
    y = jnp.maximum((conv - mean) * (inv_std * gamma) + beta, 0.0)
    o_ref[...] = y + ident           # full 128-lane (unmasked) store
    # TODO(synk): dropout with p > 0 (train-mode RNG mask) not implemented; dropout_p=0 is identity.


def conv_block_forward(x, wc, bc, gamma, beta, wd, bd, *, tm=16, mxu_dtype=jnp.bfloat16):
    """ConvBlock forward. x: (N, C_IN, L) f32 (PyTorch NCL). Returns (N, C_OUT, L).

    tm: row-block size (multiple of 8; use 512-1024 at real sizes).
    mxu_dtype: matmul operand dtype (bf16 = native MXU dtype; f32 for tight checks).
    """
    del bc  # conv bias is exactly cancelled by train-mode BN mean subtraction (no-op)
    assert tm % 8 == 0
    n, c_in, l = x.shape
    c_out, _, k = wc.shape
    p = k - 1
    l_out = l + p                                   # conv length before the causal crop
    r = n * l_out
    kc = k * c_in
    kc_pad = ((kc + 1 + LANE - 1) // LANE) * LANE   # 128-aligned contraction (zeros are inert)
    r_pad = ((r + tm - 1) // tm) * tm
    grid = (r_pad // tm,)

    # ---- wrapper-side layout work (XLA data movement) ----
    # TODO(synk): at real sizes build the K-tap unfold in-kernel from a (tm+K-1, C_IN) tile
    # instead of materializing the K-fold im2col copy in HBM (3x read traffic on v5e/v6e).
    x_nlc = jnp.transpose(x, (0, 2, 1))                       # (N, L, C_IN)
    xpad = jnp.pad(x_nlc, ((0, 0), (p, p), (0, 0)))           # both-side pad == PyTorch padding=K-1
    # im2col / unfold:  u[n*l_out + o, t*C_IN + c] = xpad[n, o + t, c]
    u = jnp.stack([xpad[:, t:t + l_out, :] for t in range(k)], axis=2).reshape(r, kc)
    u = jnp.concatenate([u, jnp.ones((r, 1), jnp.float32)], axis=1)   # ones col -> downsample bias
    u = jnp.pad(u, ((0, r_pad - r), (0, kc_pad - (kc + 1)))).astype(mxu_dtype)

    # Fused weight: conv taps at lanes [0,c_out); downsample (the t=K-1 "current time" tap)
    # plus its bias at lanes [LANE, LANE+c_out); everything else zero.
    w_conv = jnp.transpose(wc, (2, 1, 0)).reshape(kc, c_out)
    wf = jnp.zeros((kc_pad, 2 * LANE), jnp.float32)
    wf = wf.at[:kc, :c_out].set(w_conv)
    wf = wf.at[p * c_in:kc, LANE:LANE + c_out].set(jnp.transpose(wd))
    wf = wf.at[kc, LANE:LANE + c_out].set(bd)
    wf = wf.astype(mxu_dtype)

    # BN affine params packed into ONE lane-padded array (one DMA instead of three).
    params = jnp.zeros((2, LANE), jnp.float32)
    params = params.at[0, :c_out].set(gamma)
    params = params.at[1, :c_out].set(beta)

    # ---- pass 1: fused matmul + BN stats (sequential row-block axis, accumulator scratch) ----
    z, stats = pl.pallas_call(
        functools.partial(_matmul_stats_kernel, n_rows=r),
        grid=grid,
        in_specs=[
            pl.BlockSpec((tm, kc_pad), lambda i: (i, 0)),
            pl.BlockSpec((kc_pad, 2 * LANE), lambda i: (0, 0)),
        ],
        out_specs=[
            pl.BlockSpec((tm, 2 * LANE), lambda i: (i, 0)),
            pl.BlockSpec((2, LANE), lambda i: (0, 0)),
        ],
        out_shape=[
            jax.ShapeDtypeStruct((r_pad, 2 * LANE), jnp.float32),
            jax.ShapeDtypeStruct((2, LANE), jnp.float32),
        ],
        scratch_shapes=[pltpu.VMEM((2, LANE), jnp.float32)],
        compiler_params=pltpu.CompilerParams(
            dimension_semantics=("arbitrary",),              # stats accumulate across blocks
            vmem_limit_bytes=VMEM_LIMIT_BYTES),
    )(u, wf)

    # ---- pass 2: normalize + ReLU + skip (parallel row blocks -> both v7x TensorCores) ----
    out = pl.pallas_call(
        _bn_relu_skip_kernel,
        grid=grid,
        in_specs=[
            pl.BlockSpec((tm, 2 * LANE), lambda i: (i, 0)),
            pl.BlockSpec((2, LANE), lambda i: (0, 0)),
            pl.BlockSpec((2, LANE), lambda i: (0, 0)),
        ],
        out_specs=pl.BlockSpec((tm, LANE), lambda i: (i, 0)),
        out_shape=jax.ShapeDtypeStruct((r_pad, LANE), jnp.float32),
        compiler_params=pltpu.CompilerParams(
            dimension_semantics=("parallel",),
            vmem_limit_bytes=VMEM_LIMIT_BYTES),
    )(z, stats, params)

    # causal crop (== x[:, :, :-(K-1)]) and back to NCL
    y = out[:r, :c_out].reshape(n, l_out, c_out)[:, :l, :]
    return jnp.transpose(y, (0, 2, 1))


def _reference_forward(x, wc, bc, gamma, beta, wd, bd):
    """Pure-JAX transcription of the PyTorch ConvBlock forward (train mode, dropout_p=0)."""
    p = wc.shape[-1] - 1
    hi = jax.lax.Precision.HIGHEST
    conv = jax.lax.conv_general_dilated(
        x, wc, window_strides=(1,), padding=[(p, p)],
        dimension_numbers=("NCH", "OIH", "NCH"), precision=hi) + bc[None, :, None]
    mean = jnp.mean(conv, axis=(0, 2), keepdims=True)
    var = jnp.mean((conv - mean) ** 2, axis=(0, 2), keepdims=True)
    y = (conv - mean) * jax.lax.rsqrt(var + BN_EPS) * gamma[None, :, None] + beta[None, :, None]
    y = jnp.maximum(y, 0.0)[:, :, :x.shape[-1]]            # ReLU, then causal crop
    ident = jnp.einsum("ncl,oc->nol", x, wd, precision=hi) + bd[None, :, None]
    return y + ident


if __name__ == "__main__":
    key = jax.random.PRNGKey(0)
    k_x, k_wc, k_bc, k_g, k_b, k_wd, k_bd = jax.random.split(key, 7)

    # deterministic synthetic parameters (shapes match nn.Conv1d / nn.BatchNorm1d / nn.Linear)
    wc = 0.1 * jax.random.normal(k_wc, (C_OUT, C_IN, K), jnp.float32)    # conv.weight
    bc = 0.1 * jax.random.normal(k_bc, (C_OUT,), jnp.float32)            # conv.bias
    gamma = 1.0 + 0.1 * jax.random.normal(k_g, (C_OUT,), jnp.float32)    # bn.weight
    beta = 0.1 * jax.random.normal(k_b, (C_OUT,), jnp.float32)           # bn.bias
    wd = 0.1 * jax.random.normal(k_wd, (C_OUT, C_IN), jnp.float32)       # downsample.weight
    bd = 0.1 * jax.random.normal(k_bd, (C_OUT,), jnp.float32)            # downsample.bias

    x = jax.random.normal(k_x, (N, C_IN, L), jnp.float32)

    ref = _reference_forward(x, wc, bc, gamma, beta, wd, bd)

    # Default path: bf16 MXU operands (native MXU dtype on v5e/v6e/v7x), f32 stats/affine.
    out_bf16 = conv_block_forward(x, wc, bc, gamma, beta, wd, bd, mxu_dtype=jnp.bfloat16)
    jax.block_until_ready(out_bf16)
    assert out_bf16.shape == (N, C_OUT, L)
    # Tolerance reflects bf16 rounding of the matmul operands, amplified by 1/std in BN.
    err_bf16 = float(jnp.max(jnp.abs(out_bf16 - ref)))
    assert jnp.allclose(out_bf16, ref, atol=1e-1, rtol=1e-1), f"bf16 max abs err = {err_bf16}"

    # f32 MXU path: tight check that the fused two-pass structure is numerically faithful.
    out_f32 = conv_block_forward(x, wc, bc, gamma, beta, wd, bd, mxu_dtype=jnp.float32)
    jax.block_until_ready(out_f32)
    err_f32 = float(jnp.max(jnp.abs(out_f32 - ref)))
    assert jnp.allclose(out_f32, ref, atol=5e-3, rtol=5e-3), f"f32 max abs err = {err_f32}"

    print("KERNEL_OK")
</pallas_src>

<mosaic_0001>
module attributes {stable_mosaic.version = 11 : i64} {
  func.func @_matmul_stats_kernel(%arg0: i32, %arg1: memref<16x128xbf16, #tpu.memory_space<vmem>>, %arg2: memref<128x256xbf16, #tpu.memory_space<vmem>>, %arg3: memref<16x256xf32, #tpu.memory_space<vmem>>, %arg4: memref<2x128xf32, #tpu.memory_space<vmem>>, %arg5: memref<2x128xf32, #tpu.memory_space<vmem>>) attributes {dimension_semantics = [#tpu.dimension_semantics<arbitrary>], iteration_bounds = array<i64: 3>, scalar_prefetch = 0 : i64, scratch_operands = 1 : i64, tpu.core_type = #tpu.core_type<tc>, window_params = [{transform_indices = @transform_0, window_bounds = array<i64: 16, 128>}, {pipeline_mode = #tpu.pipeline_mode<synchronous>, transform_indices = @transform_1, window_bounds = array<i64: 128, 256>}, {transform_indices = @transform_2, window_bounds = array<i64: 16, 256>}, {pipeline_mode = #tpu.pipeline_mode<synchronous>, transform_indices = @transform_3, window_bounds = array<i64: 2, 128>}]} {
    %c0_i32 = arith.constant 0 : i32
    %0 = arith.cmpi eq, %arg0, %c0_i32 : i32
    %1 = arith.extui %0 : i1 to i32
    %c0_i32_0 = arith.constant 0 : i32
    %2 = arith.cmpi ne, %1, %c0_i32_0 : i32
    scf.if %2 {
      %cst_16 = arith.constant 0.000000e+00 : f32
      %22 = vector.broadcast %cst_16 : f32 to vector<2x128xf32>
      %c0_17 = arith.constant 0 : index
      %c0_18 = arith.constant 0 : index
      %23 = vector.load %arg5[%c0_17, %c0_18] : memref<2x128xf32, #tpu.memory_space<vmem>>, vector<2x128xf32>
      tpu.vector_store %arg5[%c0_17, %c0_18], %22 {strides = array<i32>} : memref<2x128xf32, #tpu.memory_space<vmem>>, vector<2x128xf32>,
    } else {
    }
    %c0 = arith.constant 0 : index
    %c0_1 = arith.constant 0 : index
    %3 = vector.load %arg1[%c0, %c0_1] : memref<16x128xbf16, #tpu.memory_space<vmem>>, vector<16x128xbf16>
    %c0_2 = arith.constant 0 : index
    %c0_3 = arith.constant 0 : index
    %4 = vector.load %arg2[%c0_2, %c0_3] : memref<128x256xbf16, #tpu.memory_space<vmem>>, vector<128x256xbf16>
    %cst = arith.constant dense<0.000000e+00> : vector<16x256xf32>
    %5 = tpu.matmul %3, %4, %cst {dimension_numbers = #tpu.dot_dimension_numbers<[1], [0], [0], [1], [0, 0, 1, 1], [], []>} : vector<16x128xbf16>, vector<128x256xbf16>, vector<16x256xf32> -> vector<16x256xf32>
    %c0_4 = arith.constant 0 : index
    %c0_5 = arith.constant 0 : index
    %6 = vector.load %arg3[%c0_4, %c0_5] : memref<16x256xf32, #tpu.memory_space<vmem>>, vector<16x256xf32>
    tpu.vector_store %arg3[%c0_4, %c0_5], %5 {strides = array<i32>} : memref<16x256xf32, #tpu.memory_space<vmem>>, vector<16x256xf32>,
    %7 = vector.extract_strided_slice %5 {offsets = [0, 0], sizes = [16, 128], strides = [1, 1]} : vector<16x256xf32> to vector<16x128xf32>
    %c0_6 = arith.constant 0 : index
    %c0_7 = arith.constant 0 : index
    %8 = vector.load %arg5[%c0_6, %c0_7] : memref<2x128xf32, #tpu.memory_space<vmem>>, vector<1x128xf32>
    %cst_8 = arith.constant dense<0.000000e+00> : vector<128xf32>
    %9 = vector.multi_reduction <add>, %7, %cst_8 [0] : vector<16x128xf32> to vector<128xf32>
    %10 = vector.shape_cast %9 : vector<128xf32> to vector<1x128xf32>
    %11 = arith.addf %8, %10 : vector<1x128xf32>
    %c0_9 = arith.constant 0 : index
    %c0_10 = arith.constant 0 : index
    %12 = vector.load %arg5[%c0_9, %c0_10] : memref<2x128xf32, #tpu.memory_space<vmem>>, vector<1x128xf32>
    tpu.vector_store %arg5[%c0_9, %c0_10], %11 {strides = array<i32>} : memref<2x128xf32, #tpu.memory_space<vmem>>, vector<1x128xf32>,
    %c1 = arith.constant 1 : index
    %c0_11 = arith.constant 0 : index
    %13 = vector.load %arg5[%c1, %c0_11] : memref<2x128xf32, #tpu.memory_space<vmem>>, vector<1x128xf32>
    %14 = arith.mulf %7, %7 : vector<16x128xf32>
    %cst_12 = arith.constant dense<0.000000e+00> : vector<128xf32>
    %15 = vector.multi_reduction <add>, %14, %cst_12 [0] : vector<16x128xf32> to vector<128xf32>
    %16 = vector.shape_cast %15 : vector<128xf32> to vector<1x128xf32>
    %17 = arith.addf %13, %16 : vector<1x128xf32>
    %c1_13 = arith.constant 1 : index
    %c0_14 = arith.constant 0 : index
    %18 = vector.load %arg5[%c1_13, %c0_14] : memref<2x128xf32, #tpu.memory_space<vmem>>, vector<1x128xf32>
    tpu.vector_store %arg5[%c1_13, %c0_14], %17 {strides = array<i32>} : memref<2x128xf32, #tpu.memory_space<vmem>>, vector<1x128xf32>,
    %c2_i32 = arith.constant 2 : i32
    %19 = arith.cmpi eq, %arg0, %c2_i32 : i32
    %20 = arith.extui %19 : i1 to i32
    %c0_i32_15 = arith.constant 0 : i32
    %21 = arith.cmpi ne, %20, %c0_i32_15 : i32
    scf.if %21 {
      %c0_16 = arith.constant 0 : index
      %c0_17 = arith.constant 0 : index
      %22 = vector.load %arg5[%c0_16, %c0_17] : memref<2x128xf32, #tpu.memory_space<vmem>>, vector<1x128xf32>
      %cst_18 = arith.constant 0.027777778 : f32
      %23 = vector.broadcast %cst_18 : f32 to vector<1x128xf32>
      %24 = arith.mulf %22, %23 : vector<1x128xf32>
      %c1_19 = arith.constant 1 : index
      %c0_20 = arith.constant 0 : index
      %25 = vector.load %arg5[%c1_19, %c0_20] : memref<2x128xf32, #tpu.memory_space<vmem>>, vector<1x128xf32>
      %cst_21 = arith.constant 0.027777778 : f32
      %26 = vector.broadcast %cst_21 : f32 to vector<1x128xf32>
      %27 = arith.mulf %25, %26 : vector<1x128xf32>
      %28 = arith.mulf %24, %24 : vector<1x128xf32>
      %29 = arith.subf %27, %28 : vector<1x128xf32>
      %cst_22 = arith.constant 0.000000e+00 : f32
      %30 = vector.broadcast %cst_22 : f32 to vector<1x128xf32>
      %31 = arith.maximumf %29, %30 : vector<1x128xf32>
      %c0_23 = arith.constant 0 : index
      %c0_24 = arith.constant 0 : index
      %32 = vector.load %arg4[%c0_23, %c0_24] : memref<2x128xf32, #tpu.memory_space<vmem>>, vector<1x128xf32>
      tpu.vector_store %arg4[%c0_23, %c0_24], %24 {strides = array<i32>} : memref<2x128xf32, #tpu.memory_space<vmem>>, vector<1x128xf32>,
      %cst_25 = arith.constant 9.99999974E-6 : f32
      %33 = vector.broadcast %cst_25 : f32 to vector<1x128xf32>
      %34 = arith.addf %31, %33 : vector<1x128xf32>
      %35 = math.rsqrt %34 : vector<1x128xf32>
      %c1_26 = arith.constant 1 : index
      %c0_27 = arith.constant 0 : index
      %36 = vector.load %arg4[%c1_26, %c0_27] : memref<2x128xf32, #tpu.memory_space<vmem>>, vector<1x128xf32>
      tpu.vector_store %arg4[%c1_26, %c0_27], %35 {strides = array<i32>} : memref<2x128xf32, #tpu.memory_space<vmem>>, vector<1x128xf32>,
    } else {
    }
    return
  }
  func.func @transform_0(%arg0: i32) -> (i32, i32) {
    %c0_i32 = arith.constant 0 : i32
    %c0_i32_0 = arith.constant 0 : i32
    return %arg0, %c0_i32 : i32, i32
  }
  func.func @transform_1(%arg0: i32) -> (i32, i32) {
    %c0_i32 = arith.constant 0 : i32
    %c0_i32_0 = arith.constant 0 : i32
    %c0_i32_1 = arith.constant 0 : i32
    return %c0_i32, %c0_i32_0 : i32, i32
  }
  func.func @transform_2(%arg0: i32) -> (i32, i32) {
    %c0_i32 = arith.constant 0 : i32
    %c0_i32_0 = arith.constant 0 : i32
    return %arg0, %c0_i32 : i32, i32
  }
  func.func @transform_3(%arg0: i32) -> (i32, i32) {
    %c0_i32 = arith.constant 0 : i32
    %c0_i32_0 = arith.constant 0 : i32
    %c0_i32_1 = arith.constant 0 : i32
    return %c0_i32, %c0_i32_0 : i32, i32
  }
}

</mosaic_0001>

<bundles_post_ra>
// kernel: tpu_custom_call.1
= control target key start
LH: loop header
LB: loop body
LE: loop exit
PB: predicated region body
PF: predicated region fallthrough
CT: control target
= control target key end

     0   :  { %9 = vsyncpa [#allocation4], 0  ;;  %s1057_s0 = inlined_call_operand.hbm [shape: bf16[48,128], index: 0, kind: input, shape index: {}]   ;;  %s1058_s1 = inlined_call_operand.hbm [shape: bf16[128,256], index: 1, kind: input, shape index: {}]   ;;  %s1059_s2 = inlined_call_operand.hbm [shape: f32[48,256], index: 2, kind: output, shape index: {0}]   ;;  %s1060_s3 = inlined_call_operand.hbm [shape: f32[2,128], index: 3, kind: output, shape index: {1}]  }
   0x1   :  { %11 = vsyncpa [#allocation4 + $0x1], 0 }
   0x2   :  { %12 = vsyncpa [#allocation7], 0 }
   0x3   :  { %13 = vsyncpa [#allocation5], 0 }
   0x4   :  { %15 = vsyncpa [#allocation5 + $0x1], 0 }
   0x5   :  { %16 = vsyncpa [#allocation10], 0  ;;  %s895_s12 = smov 0   ;;  %s897_s13 = smov 0  }
   0x6   :  { %s899_s14 = smov 0   ;;  %s901_s15 = smov 0  }
   0x7 LB: > { %s916_s16 = sadd.s32 4294967295, %s864_s15   ;;  %s520_s17 = sadd.s32 4294967294, %s864_s15   ;;  %s864_s15 = sphi %s901_s15, %s1074_s15   ;;  %s860_s14 = sphi %s899_s14, %s1073_s14   ;;  %s856_s13 = sphi %s897_s13, %s1072_s13   ;;  %s852_s12 = sphi %s895_s12, %s1071_s12  }
   0x8   : > { %p42_p0 = scmp.ne.s32.totalorder %s856_s13, %s852_s12  ;;  %p43_p1 = scmp.eq.s32.totalorder %s916_s16, 0 }
   0x9   : > { %p1061_p2 = scmp.eq.s32.totalorder %s916_s16, 2  ;;  %p93_p3 = scmp.eq.s32.totalorder %s520_s17, 2 }
   0xa   : > { %p925_p4 = por %p43_p1, %p42_p0  ;;  %p521_p5 = scmp.ge.s32.totalorder %s864_s15, 1 }
   0xb   : > { %p930_p6 = por %p93_p3, %p42_p0  ;;  %p121_p7 = scmp.lt.s32.totalorder %s864_s15, 4 }
   0xc   : > { %s132_s22 = sshll.u32 %s1058_s1, 4  ;;  %s866_s24 = smov [#allocation6]   ;;  %s133_s22 = int_to_ptr.hbm [resolvable:$true] %s132_s22 }
   0xd   : > { %p939_p9 = pnand %p521_p5, %p121_p7  ;;  %s134_s25 = sshll.u32 %s866_s24, 4  ;;  %s135_s25 = int_to_ptr.vmem [resolvable:$true] %s134_s25 }
   0xe   : > { %s948_s26 = sadd.s32 1, %s864_s15   ;;  %s867_s27 = smov 128  }
   0xf   : > { %p641_p10 = pneg %p939_p9  ;;  %s868_s28 = smov 8  }
  0x10   : > { %s26_s29 = ssub.s32 %s864_s15, %s948_s26  ;;  %s29_s30 = sadd.s32 1, %s860_s14 }
  0x11   : > { %p642_p11 = pnand %p641_p10, %p43_p1  ;;  %p27_p12 = scmp.eq.s32.totalorder %s26_s29, 0 }
  0x12   : > { %p36_p13 = scmp.ne.s32.totalorder %s860_s14, %s856_s13  ;;  %p37_p0 = scmp.eq.s32.totalorder %s864_s15, 0 }
  0x13   : > { %644 = dma.hbm_to_vmem [thread:$0]  (!%p642_p11), %s133_s22, 2048, %s135_s25, [#allocation7], %s867_s27, %s867_s27, %s868_s28  }
  0x14   : > { %p654_p3 = scmp.lt.s32.totalorder %s864_s15, 3  ;;  %p38_p5 = por %p37_p0, %p36_p13 }
  0x15   : > { %s958_s4 = scalar_select %p27_p12, %s860_s14, %s29_s30  }
  0x16   : > { %p962_p7 = por %p1061_p2, %p36_p13  ;;  %s148_s6 = sand.u32 1, %s860_s14  }
  0x17   : > { %s609_s7 = sshll.u32 %s864_s15, 3  ;;  %s524_s8 = sshll.u32 %s148_s6, 3 }
  0x18   : > { %s157_s11 = scalar_lea.hbm %s1057_s0, %s609_s7  ;;  %s152_s20 = scalar_lea.vmem [#allocation3], %s524_s8 }
  0x19   : > { %s158_s17 = sshll.u32 %s157_s11, 4  ;;  %s160_s21 = sshll.u32 %s152_s20, 4  ;;  %s159_s17 = int_to_ptr.hbm [resolvable:$true] %s158_s17  ;;  %s161_s21 = int_to_ptr.vmem [resolvable:$true] %s160_s21 }
  0x1a   : > { %p973_p10 = pnand %p654_p3, %p38_p5  ;;  %s149_s24 = scalar_lea.sflag [#allocation4], %s148_s6 }
  0x1b   : > { %s732_s25 = sshra.s32 %s159_s17, 4  ;;  %s739_s30 = scalar_lea.hbm %s1057_s0, 24  ;;  %s733_s25 = int_to_ptr.hbm [resolvable:$true] %s732_s25 }
  0x1c   : > { %s734_s27 = scalar_lea.hbm %s733_s25, 8  ;;  %p736_p12 = pneg %p973_p10 }
  0x1d   : > { %p735_p11 = scmp.ne.s32.totalorder %s733_s25, %s734_s27  ;;  %p740_p3 = scmp.lt.s32.totalorder %s733_s25, %s1057_s0 }
  0x1e   : > { %p741_p5 = scmp.lt.s32.totalorder %s739_s30, %s734_s27 }
  0x1f   : > { %p737_p13 = pnand %p736_p12, %p735_p11 }
  0x20   : > { %p742_p2 = por %p741_p5, %p740_p3 }
  0x21   : > { %p738_p0 = pneg %p737_p13 }
  0x23   : > { %p743_p8 = pnand %p742_p2, %p738_p0 }
  0x25   : > { %746 = shalt.err (!%p743_p8)
}
  0x26   : > { %s869_s6 = smov 64   ;;  %s870_s9 = smov 4  }
  0x27   : > { %648 = dma.hbm_to_vmem [thread:$0]  (!%p973_p10), %s159_s17, 128, %s161_s21, %s149_s24, %s869_s6, %s869_s6, %s870_s9  }
  0x28   : > { %172 = sbr.rel (%p939_p9) target bundleno = 302 (0x12e), region = 28  ;;  %s990_s10 = sand.u32 (!%p939_p9), 1, %s856_s13  }
  0x29   : > { %s528_s11 = sshll.u32 (!%p939_p9), %s990_s10, 3  ;;  %s175_s20 = scalar_lea.sflag (!%p939_p9), [#allocation4], %s990_s10 }
  0x2a   : > { %s994_s25 = scalar_lea.vmem (!%p939_p9), [#allocation3], %s528_s11 }
  0x2d   : > { %835 = dma.done.wait (%p925_p4), %s175_s20, 128  }
  0x2e   : > { %837 = vsyncadd (%p925_p4), %s175_s20, 4294967168 }
  0x2f   : > { %839 = dma.done.wait (%p43_p1), [#allocation7], 2048  }
  0x30   : > { %841 = vsyncadd (%p43_p1), [#allocation7], 4294965248  ;;  %s530_s23 = sshll.u32 %s990_s10, 5  ;;  %p1067_p2 = scmp.ne.s32.totalorder %s916_s16, 0 }
  0x31   : > { %s1005_s17 = scalar_lea.vmem [#allocation8], %s530_s23 }
  0x32   : > { %212 = sbr.rel (%p1067_p2) target bundleno = 57 (0x39), region = 40 }
  0x37   : > { %v871_v0 = vmov 0.0  }
  0x38   : > { %213 = vst [vmem:[#allocation2] sm:$0x3] %v871_v0 }
  0x39 PF: > { %v594_v1 = vld [vmem:[#allocation6 + $0x70] sm:$0xf]  ;;  %v626_v2 = vld [vmem:[#allocation6 + $0x74] sm:$0xf0]  ;;  %v586_v3 = vld [vmem:[#allocation6 + $0x60] sm:$0xf] }
  0x3a   : > { %v595_v4 = vor.u32 %v626_v2, %v594_v1  ;;  %v624_v5 = vld [vmem:[#allocation6 + $0x64] sm:$0xf0]  ;;  %v625_v6 = vld [vmem:[#allocation6 + $0x74] sm:$0xf]  ;;  %v596_v7 = vld [vmem:[#allocation6 + $0x78] sm:$0xf0] }
  0x3b   : > { %v587_v8 = vor.u32 %v624_v5, %v586_v3  ;;  %v599_v9 = vor.u32 %v625_v6, %v596_v7  ;;  %v623_v10 = vld [vmem:[#allocation6 + $0x64] sm:$0xf]  ;;  %v588_v11 = vld [vmem:[#allocation6 + $0x68] sm:$0xf0]  ;;  %v578_v12 = vld [vmem:[#allocation6 + $0x50] sm:$0xf] }
  0x3c   : > { %318 = vmatpush.bf16.msra.mxu0 %v595_v4  ;;  %v622_v13 = vld [vmem:[#allocation6 + $0x54] sm:$0xf0]  ;;  %v591_v14 = vor.u32 %v623_v10, %v588_v11  ;;  %v621_v15 = vld [vmem:[#allocation6 + $0x54] sm:$0xf]  ;;  %v580_v16 = vld [vmem:[#allocation6 + $0x58] sm:$0xf0] }
  0x3d   : > { %332 = vmatpush.bf16.msra.mxu1 %v599_v9  ;;  %v579_v17 = vor.u32 %v622_v13, %v578_v12  ;;  %v570_v18 = vld [vmem:[#allocation6 + $0x40] sm:$0xf]  ;;  %v620_v19 = vld [vmem:[#allocation6 + $0x44] sm:$0xf0]  ;;  %v583_v20 = vor.u32 %v621_v15, %v580_v16  ;;  %v619_v21 = vld [vmem:[#allocation6 + $0x44] sm:$0xf] }
  0x3e   : > { %v572_v22 = vld [vmem:[#allocation6 + $0x48] sm:$0xf0]  ;;  %v571_v23 = vor.u32 %v620_v19, %v570_v18  ;;  %v562_v24 = vld [vmem:[#allocation6 + $0x30] sm:$0xf]  ;;  %v618_v25 = vld [vmem:[#allocation6 + $0x34] sm:$0xf0] }
  0x3f   : > { %v575_v26 = vor.u32 %v619_v21, %v572_v22  ;;  %v617_v27 = vld [vmem:[#allocation6 + $0x34] sm:$0xf]  ;;  %v564_v28 = vld [vmem:[#allocation6 + $0x38] sm:$0xf0]  ;;  %v563_v29 = vor.u32 %v618_v25, %v562_v24  ;;  %v554_v30 = vld [vmem:[#allocation6 + $0x20] sm:$0xf] }
  0x40   : > { %319 = vmatpush.bf16.msra.mxu0 %v587_v8  ;;  %v616_v31 = vld [vmem:[#allocation6 + $0x24] sm:$0xf0]  ;;  %v567_v32 = vor.u32 %v617_v27, %v564_v28  ;;  %v615_v33 = vld [vmem:[#allocation6 + $0x24] sm:$0xf]  ;;  %v556_v34 = vld [vmem:[#allocation6 + $0x28] sm:$0xf0] }
  0x41   : > { %333 = vmatpush.bf16.msra.mxu1 %v591_v14  ;;  %v555_v35 = vor.u32 %v616_v31, %v554_v30  ;;  %v546_v36 = vld [vmem:[#allocation6 + $0x10] sm:$0xf]  ;;  %v614_v37 = vld [vmem:[#allocation6 + $0x14] sm:$0xf0]  ;;  %v559_v38 = vor.u32 %v615_v33, %v556_v34  ;;  %v613_v39 = vld [vmem:[#allocation6 + $0x14] sm:$0xf] }
  0x42   : > { %v548_v40 = vld [vmem:[#allocation6 + $0x18] sm:$0xf0]  ;;  %v547_v41 = vor.u32 %v614_v37, %v546_v36  ;;  %v538_v42 = vld [vmem:[#allocation6] sm:$0xf]  ;;  %v612_v43 = vld [vmem:[#allocation6 + $0x4] sm:$0xf0] }
  0x43   : > { %v551_v44 = vor.u32 %v613_v39, %v548_v40  ;;  %v611_v45 = vld [vmem:[#allocation6 + $0x4] sm:$0xf]  ;;  %v540_v46 = vld [vmem:[#allocation6 + $0x8] sm:$0xf0]  ;;  %v539_v47 = vor.u32 %v612_v43, %v538_v42  ;;  %v610_v49 = vld [vmem:[%s994_s25] sm:$0xff]  ;;  %p600_p1 = scmp.ne.s32.totalorder %s916_s16, 2 }
  0x44   : > { %320 = vmatpush.bf16.msra.mxu0 %v579_v17  ;;  %v543_v48 = vor.u32 %v611_v45, %v540_v46  ;;  %v350_v3 = vld [vmem:[#allocation2] sm:$0x1]  ;;  %v360_v6 = vld [vmem:[#allocation2 + $0x1] sm:$0x1] }
  0x45   : > { %334 = vmatpush.bf16.msra.mxu1 %v583_v20 }
  0x48   : > { %321 = vmatpush.bf16.msra.mxu0 %v571_v23 }
  0x49   : > { %335 = vmatpush.bf16.msra.mxu1 %v575_v26 }
  0x4c   : > { %322 = vmatpush.bf16.msra.mxu0 %v563_v29 }
  0x4d   : > { %336 = vmatpush.bf16.msra.mxu1 %v567_v32 }
  0x50   : > { %323 = vmatpush.bf16.msra.mxu0 %v555_v35 }
  0x51   : > { %337 = vmatpush.bf16.msra.mxu1 %v559_v38 }
  0x54   : > { %324 = vmatpush.bf16.msra.mxu0 %v547_v41 }
  0x55   : > { %338 = vmatpush.bf16.msra.mxu1 %v551_v44 }
  0x58   : > { %325 = vmatpush.bf16.msra.mxu0 %v539_v47 }
  0x59   : > { %339 = vmatpush.bf16.msra.mxu1 %v543_v48 }
  0x5b   : > { %326 = vmatmul.bf16.vlgmr.msra.gmra.mxu0 %v610_v49 }
  0x5c   : > { %340 = vmatmul.bf16.vlgmr.msra.gmra.mxu1 %v610_v49 }
  0xd8   : > { %v327_v50 = vpop.f32.mrf.mxu0 }
  0xd9   : > { %346 = vst [vmem:[%s1005_s17] sm:$0xff] %v327_v50  ;;  %v341_v51 = vpop.f32.mrf.mxu1  ;;  %v361_v53 = vmul.f32 %v327_v50, %v327_v50 }
  0xda   : > { %347 = vst [vmem:[%s1005_s17 + $0x8] sm:$0xff] %v341_v51 }
  0xe0   : > { %v329_v52 = vpop.f32.mrf.mxu0 }
  0xe1   : > { %348 = vst [vmem:[%s1005_s17 + $0x10] sm:$0xff] %v329_v52  ;;  %v351_v54 = vadd.f32 %v329_v52, %v327_v50  ;;  %v362_v55 = vmul.f32 %v329_v52, %v329_v52  ;;  %v343_v56 = vpop.f32.mrf.mxu1 }
  0xe2   : > { %349 = vst [vmem:[%s1005_s17 + $0x18] sm:$0xff] %v343_v56 }
  0xe3   : > { %v352_v57 = vrot.slane %v351_v54, 4  ;;  %v363_v58 = vadd.f32 %v362_v55, %v361_v53 }
  0xe5   : > { %v353_v59 = vadd.f32 %v352_v57, %v351_v54  ;;  %v364_v60 = vrot.slane %v363_v58, 4 }
  0xe7   : > { %v354_v61 = vrot.slane %v353_v59, 2  ;;  %v365_v62 = vadd.f32 %v364_v60, %v363_v58 }
  0xe9   : > { %v355_v63 = vadd.f32 %v354_v61, %v353_v59  ;;  %v366_v0 = vrot.slane %v365_v62, 2 }
  0xeb   : > { %v356_v1 = vrot.slane %v355_v63, 1  ;;  %v367_v2 = vadd.f32 %v366_v0, %v365_v62 }
  0xed   : > { %v357_v4 = vadd.f32 %v356_v1, %v355_v63  ;;  %v368_v5 = vrot.slane %v367_v2, 1 }
  0xef   : > { %v358_v7 = vadd.f32 %v357_v4, %v350_v3  ;;  %v369_v8 = vadd.f32 %v368_v5, %v367_v2  ;;  %375 = sbr.rel (%p600_p1) target bundleno = 278 (0x116), region = 44 }
  0xf1   : > { %359 = vst [vmem:[#allocation2] sm:$0x1] %v358_v7  ;;  %v370_v9 = vadd.f32 %v369_v8, %v360_v6 }
  0xf3   : > { %371 = vst [vmem:[#allocation2 + $0x1] sm:$0x1] %v370_v9 }
  0xf8   : > { %v376_v10 = vld [vmem:[#allocation2] sm:$0x1] }
  0xf9   : > { %v377_v12 = vmul.f32 0.027777778, %v376_v10 }
  0xfa   : > { %v378_v11 = vld [vmem:[#allocation2 + $0x1] sm:$0x1] }
  0xfb   : > { %v379_v13 = vmul.f32 0.027777778, %v378_v11  ;;  %v380_v14 = vmul.f32 %v377_v12, %v377_v12  ;;  %383 = vst [vmem:[#allocation9] sm:$0x1] %v377_v12 }
  0xfd   : > { %v381_v15 = vsub.f32 %v379_v13, %v380_v14 }
  0xff   : > { %v382_v16 = vmax.f32 %v381_v15, 0.0 }
 0x101   : > { %v384_v17 = vadd.f32 1e-05, %v382_v16 }
 0x103   : > { %700 = vrsqrt.f32 %v384_v17  ;;  %vm391_vm0 = vweird.f32 %v384_v17 }
 0x109   : > { %v701_v18 = vpop.eup %700 }
 0x10a   : > { %v386_v19 = vmul.f32 %v701_v18, %v384_v17  ;;  %vm392_vm1 = vweird.f32 %v701_v18 }
 0x10b   : > { %vm393_vm2 = vmor %vm391_vm0, %vm392_vm1 }
 0x10c   : > { %v387_v20 = vmul.f32 %v701_v18, %v386_v19 }
 0x10e   : > { %v388_v21 = vmul.f32 0.5, %v387_v20 }
 0x110   : > { %v389_v22 = vsub.f32 1.5, %v388_v21 }
 0x112   : > { %v390_v23 = vmul.f32 %v701_v18, %v389_v22 }
 0x114   : > { %v394_v24 = vsel %vm393_vm2, %v701_v18, %v390_v23 }
 0x115   : > { %395 = vst [vmem:[#allocation9 + $0x1] sm:$0x1] %v394_v24 }
 0x116 PF: > { %s628_s18 = sshll.u32 %s916_s16, 5  ;;  %s410_s27 = sshll.u32 %s1005_s17, 4  ;;  %s411_s27 = int_to_ptr.vmem [resolvable:$true] %s410_s27 }
 0x117   : > { %s409_s24 = scalar_lea.hbm %s1059_s2, %s628_s18  ;;  %s397_s29 = scalar_lea.sflag [#allocation5], %s990_s10 }
 0x118   : > { %s412_s28 = sshll.u32 %s409_s24, 4  ;;  %s782_s9 = scalar_lea.hbm %s1059_s2, 96  ;;  %s413_s28 = int_to_ptr.hbm [resolvable:$true] %s412_s28 }
 0x119   : > { %s776_s30 = sshra.s32 %s413_s28, 4  ;;  %s777_s30 = int_to_ptr.hbm [resolvable:$true] %s776_s30 }
 0x11a   : > { %s778_s7 = scalar_lea.hbm %s777_s30, 32  ;;  %p783_p10 = scmp.lt.s32.totalorder %s777_s30, %s1059_s2 }
 0x11b   : > { %p779_p4 = scmp.ne.s32.totalorder %s777_s30, %s778_s7  ;;  %p784_p11 = scmp.lt.s32.totalorder %s782_s9, %s778_s7 }
 0x11d   : > { %p780_p8 = pnand %p779_p4, %p962_p7  ;;  %p785_p12 = por %p784_p11, %p783_p10 }
 0x11f   : > { %p781_p9 = pneg %p780_p8 }
 0x121   : > { %p786_p13 = pnand %p785_p12, %p781_p9 }
 0x123   : > { %789 = shalt.err (!%p786_p13)
}
 0x124   : > { %s872_s10 = smov 256   ;;  %s873_s25 = smov 16  }
 0x125   : > { %635 = dma.vmem_to_hbm [thread:$0]  (%p962_p7), %s411_s27, 512, %s413_s28, %s397_s29, %s872_s10, %s872_s10, %s873_s25  }
 0x126   : > { %s874_s23 = smov [#allocation9]   ;;  %s427_s22 = sshll.u32 %s1060_s3, 4  ;;  %s428_s22 = int_to_ptr.hbm [resolvable:$true] %s427_s22 }
 0x127   : > { %s425_s17 = sshll.u32 %s874_s23, 4  ;;  %p1068_p0 = scmp.eq.s32.totalorder %s916_s16, 2  ;;  %s426_s17 = int_to_ptr.vmem [resolvable:$true] %s425_s17 }
 0x129   : > { %637 = dma.vmem_to_hbm [thread:$0]  (%p1068_p0), %s426_s17, 32, %s428_s22, [#allocation10]  }
 0x12a   : > { %p1069_p3 = pmov %p1068_p0 }
 0x12b   : > { %p1070_p5 = pmov %p1068_p0 }
 0x12c   : > { %843 = dma.done.wait (%p1069_p3), [#allocation10], 32  }
 0x12d   : > { %845 = vsyncadd (%p1070_p5), [#allocation10], 4294967264 }
 0x12e PF: > { %p658_p7 = scmp.ge.s32.totalorder %s864_s15, 2  ;;  %s444_s5 = sand.u32 1, %s852_s12  }
 0x12f   : > { %s445_s24 = scalar_lea.sflag [#allocation5], %s444_s5 }
 0x130   : > { %p650_p2 = pnand %p658_p7, %p930_p6 }
 0x132   : > { %p651_p1 = pneg %p650_p2 }
 0x134   : > { %847 = dma.done.wait (%p651_p1), %s445_s24, 512  }
 0x135   : > { %849 = vsyncadd (%p651_p1), %s445_s24, 4294966784  ;;  %p19_p4 = scmp.ge.s32.totalorder %s948_s26, 5   ;;  %s1071_s12 = smov %s856_s13 }
 0x136   : > { %s1072_s13 = smov %s860_s14  ;;  %s1073_s14 = smov %s958_s4 }
 0x137   : > { %s1074_s15 = smov %s948_s26  ;;  %21 = sbr.rel (!%p19_p4) target bundleno = 7 (0x7), region = 93 }
 0x13c   :  { %451 = vsyncpa [#allocation4], 1 }
 0x13d   :  { %453 = vsyncpa [#allocation4 + $0x1], 1 }
 0x13e   :  { %454 = vsyncpa [#allocation7], 1 }
 0x13f   :  { %455 = vsyncpa [#allocation5], 1 }
 0x140   :  { %457 = vsyncpa [#allocation5 + $0x1], 1 }
 0x141   :  { %458 = vsyncpa [#allocation10], 1 }

</bundles_post_ra>
